<compile_context>
chip_gen: v7x
topology: tpu7x:2x2x1
jax: 0.10.0
libtpu: 0.0.40
codegen_flags: <defaults>
</compile_context>

<pallas_src>
import math

import jax
import jax.numpy as jnp
from jax.experimental import pallas as pl
from jax.experimental.pallas import tpu as pltpu

_MIB = 1024 * 1024


def _matvec_kernel(x_ref, w_ref, o_ref):
    # x_ref: (tp, L) packed row slab.  w_ref: (L, g) scaled (block-diagonal)
    # weight, resident in VMEM (constant index map).  MXU-native (m,k)@(k,n).
    o_ref[...] = jnp.dot(
        x_ref[...], w_ref[...], preferred_element_type=jnp.float32
    ).astype(o_ref.dtype)


def _vmem_capacity_bytes():
    try:
        return int(pltpu.get_tpu_info().vmem_capacity_bytes)
    except Exception:
        return 64 * _MIB  # conservative (v7x-sized) default


def _pick_row_tile(rows, row_vmem_bytes, block_target_bytes):
    """Rows per block: large enough to amortize the ~0.35us/step overhead,
    but split into >=2 blocks when possible so the 'parallel' grid axis can
    shard across both TensorCores on v7x."""
    tp = max(8, block_target_bytes // row_vmem_bytes)
    tp = (tp // 8) * 8
    if rows <= tp:
        if rows >= 16:
            tp = (((rows + 1) // 2) + 7) // 8 * 8  # two blocks
        else:
            tp = rows                               # single full-extent block
    return tp


def uni_scaled_dot_similarity(x, weight):
    """Returns (x @ weight) / sqrt(D) with shape x.shape[:-1].

    x: (..., D) array.  weight: (D,) or (1, D) Linear weight (no bias).
    """
    D = x.shape[-1]
    lead_shape = x.shape[:-1]
    M = math.prod(lead_shape) if lead_shape else 1
    itemsize = jnp.dtype(x.dtype).itemsize
    scale = 1.0 / (D ** 0.5)

    # Fold the scale in f32 before casting to x.dtype (minimizes bf16 error;
    # identical results for the all-f32 case this module uses).
    w_scaled = weight.reshape(-1).astype(jnp.float32) * scale

    # Lane-dense packing factor.
    g0 = 128 // math.gcd(D, 128)
    if g0 > 1 and M % g0 == 0 and (D * g0 * g0 * itemsize) <= 2 * _MIB:
        g = g0                      # packed fast path (dense DMA, no lane padding)
    else:
        g = 1                       # D already 128-aligned, or M not packable
    # TODO(synk): when M % g0 != 0 a tiny jnp tail-path could keep the packed
    # layout for the bulk of the rows; the g=1 fallback is correct but pays
    # lane padding on the DMA for small non-aligned D.
    L = D * g
    Mp = M // g

    x_packed = x.reshape(Mp, L)     # contiguous reshape: no data movement
    if g == 1:
        w_block = w_scaled.reshape(D, 1)
    else:
        eye = jnp.eye(g, dtype=jnp.float32)
        # W_bd[j*D + d, j'] = w[d] * delta(j, j')
        w_block = (eye[:, None, :] * w_scaled[None, :, None]).reshape(L, g)
    # NOTE: cast to x.dtype (bf16 x => bf16 weight); scale already folded in f32.
    w_block = w_block.astype(x.dtype)

    # Generation-aware block / VMEM budget.
    vmem_cap = _vmem_capacity_bytes()
    if vmem_cap >= 128 * _MIB:          # v5e / v6e
        block_target, vmem_limit = 16 * _MIB, 64 * _MIB
    else:                               # v7x (64 MiB VMEM per TC)
        block_target, vmem_limit = 12 * _MIB, 40 * _MIB

    lanes = ((L + 127) // 128) * 128    # VMEM lane padding (only hits g=1 fallback)
    row_vmem_bytes = lanes * itemsize
    tp = _pick_row_tile(Mp, row_vmem_bytes, block_target)
    num_tiles = pl.cdiv(Mp, tp)         # ragged final block handled by Pallas

    out2d = pl.pallas_call(
        _matvec_kernel,
        out_shape=jax.ShapeDtypeStruct((Mp, g), x.dtype),
        grid_spec=pltpu.PrefetchScalarGridSpec(
            num_scalar_prefetch=0,
            grid=(num_tiles,),
            in_specs=[
                # Large streaming x slab (dense when packed); tail block ragged.
                pl.BlockSpec((tp, L), lambda i: (i, 0)),
                # Small weight matrix; constant index map -> resident in VMEM.
                pl.BlockSpec((L, g), lambda i: (0, 0)),
            ],
            out_specs=pl.BlockSpec((tp, g), lambda i: (i, 0)),
        ),
        compiler_params=pltpu.CompilerParams(
            dimension_semantics=("parallel",),
            vmem_limit_bytes=vmem_limit),
        cost_estimate=pl.CostEstimate(
            flops=2 * Mp * L * g,
            transcendentals=0,
            bytes_accessed=(Mp * L + L * g + Mp * g) * itemsize),
    )(x_packed, w_block)

    return out2d.reshape(lead_shape)


def reference(x, weight):
    D = x.shape[-1]
    w = weight.reshape(-1).astype(x.dtype)
    return (x @ w) / (D ** 0.5)


if __name__ == "__main__":
    key = jax.random.PRNGKey(0)
    k_x, k_w, k_x2, k_x3 = jax.random.split(key, 4)

    # Shapes consistent with the module: batch=2, seq=8, tensor_1_dim=32.
    B, S, D = 2, 8, 32
    x = jax.random.normal(k_x, (B, S, D), dtype=jnp.float32)

    # nn.Linear(D, 1, bias=False) default init: uniform(-1/sqrt(D), 1/sqrt(D)).
    bound = 1.0 / (D ** 0.5)
    w = jax.random.uniform(k_w, (1, D), dtype=jnp.float32, minval=-bound, maxval=bound)

    out = jax.block_until_ready(uni_scaled_dot_similarity(x, w))
    ref = reference(x, w)
    assert out.shape == (B, S), out.shape
    assert jnp.allclose(out, ref, atol=1e-5, rtol=1e-5), float(jnp.max(jnp.abs(out - ref)))

    # Multi-tile + ragged final block on the packed fast path
    # (M=3000, g=4 -> Mp=750 packed rows -> 2 blocks, second one ragged).
    x2 = jax.random.normal(k_x2, (2, 1500, D), dtype=jnp.float32)
    out2 = jax.block_until_ready(uni_scaled_dot_similarity(x2, w))
    ref2 = reference(x2, w)
    assert out2.shape == (2, 1500), out2.shape
    assert jnp.allclose(out2, ref2, atol=1e-5, rtol=1e-5), float(jnp.max(jnp.abs(out2 - ref2)))

    # M % g != 0 (M=21) -> g=1 fallback path, still multi-tile (2 blocks).
    x3 = jax.random.normal(k_x3, (3, 7, D), dtype=jnp.float32)
    out3 = jax.block_until_ready(uni_scaled_dot_similarity(x3, w))
    ref3 = reference(x3, w)
    assert out3.shape == (3, 7), out3.shape
    assert jnp.allclose(out3, ref3, atol=1e-5, rtol=1e-5), float(jnp.max(jnp.abs(out3 - ref3)))

    print("KERNEL_OK")
</pallas_src>

<mosaic_0001>
module attributes {stable_mosaic.version = 11 : i64} {
  func.func @_matvec_kernel(%arg0: i32, %arg1: memref<4x128xf32, #tpu.memory_space<vmem>>, %arg2: memref<128x4xf32, #tpu.memory_space<vmem>>, %arg3: memref<4x4xf32, #tpu.memory_space<vmem>>) attributes {dimension_semantics = [#tpu.dimension_semantics<parallel>], iteration_bounds = array<i64: 1>, scalar_prefetch = 0 : i64, scratch_operands = 0 : i64, tpu.core_type = #tpu.core_type<tc>, window_params = [{transform_indices = @transform_0, window_bounds = array<i64: 4, 128>}, {pipeline_mode = #tpu.pipeline_mode<synchronous>, transform_indices = @transform_1, window_bounds = array<i64: 128, 4>}, {transform_indices = @transform_2, window_bounds = array<i64: 4, 4>}]} {
    %c0 = arith.constant 0 : index
    %c0_0 = arith.constant 0 : index
    %0 = vector.load %arg1[%c0, %c0_0] : memref<4x128xf32, #tpu.memory_space<vmem>>, vector<4x128xf32>
    %c0_1 = arith.constant 0 : index
    %c0_2 = arith.constant 0 : index
    %1 = vector.load %arg2[%c0_1, %c0_2] : memref<128x4xf32, #tpu.memory_space<vmem>>, vector<128x4xf32>
    %cst = arith.constant dense<0.000000e+00> : vector<4x4xf32>
    %2 = tpu.matmul %0, %1, %cst {dimension_numbers = #tpu.dot_dimension_numbers<[1], [0], [0], [1], [0, 0, 1, 1], [], []>} : vector<4x128xf32>, vector<128x4xf32>, vector<4x4xf32> -> vector<4x4xf32>
    %c0_3 = arith.constant 0 : index
    %c0_4 = arith.constant 0 : index
    %3 = vector.load %arg3[%c0_3, %c0_4] : memref<4x4xf32, #tpu.memory_space<vmem>>, vector<4x4xf32>
    tpu.vector_store %arg3[%c0_3, %c0_4], %2 {strides = array<i32>} : memref<4x4xf32, #tpu.memory_space<vmem>>, vector<4x4xf32>,
    return
  }
  func.func @transform_0(%arg0: i32) -> (i32, i32) {
    %c0_i32 = arith.constant 0 : i32
    %c0_i32_0 = arith.constant 0 : i32
    return %arg0, %c0_i32 : i32, i32
  }
  func.func @transform_1(%arg0: i32) -> (i32, i32) {
    %c0_i32 = arith.constant 0 : i32
    %c0_i32_0 = arith.constant 0 : i32
    %c0_i32_1 = arith.constant 0 : i32
    return %c0_i32, %c0_i32_0 : i32, i32
  }
  func.func @transform_2(%arg0: i32) -> (i32, i32) {
    %c0_i32 = arith.constant 0 : i32
    %c0_i32_0 = arith.constant 0 : i32
    return %arg0, %c0_i32 : i32, i32
  }
}

</mosaic_0001>

<bundles_post_ra>
// kernel: tpu_custom_call.1
= control target key start
LH: loop header
LB: loop body
LE: loop exit
PB: predicated region body
PF: predicated region fallthrough
CT: control target
= control target key end

     0   :  { %v219_v3 = vmov 0.0|0.0   ;;  %vm220_vm0 = vmmov 0   ;;  %v221_v6 = vmov 0.0   ;;  %s301_s0 = inlined_call_operand.vmem [shape: f32[4,128], index: 0, kind: input, shape index: {}]   ;;  %s302_s1 = inlined_call_operand.vmem [shape: f32[128,4], index: 1, kind: input, shape index: {}]   ;;  %s303_s2 = inlined_call_operand.hbm [shape: f32[4,4], index: 2, kind: output, shape index: {}]  }
   0x1   :  { %v13_v0 = vld [vmem:[%s302_s1] sm:$0xff]  ;;  %v14_v1 = vld [vmem:[%s302_s1 + $0x8] sm:$0xff]  ;;  %v15_v2 = vld [vmem:[%s302_s1 + $0x10] sm:$0xff]  ;;  %167 = vmatprep.subr.bf16.mxu0 %v219_v3  ;;  %164 = vmatprep.mubr.msk.f32.mxu0 %vm220_vm0, %v221_v6 }
   0x2   :  { %v168_v4 = vpack.c.bf16 %v14_v1, %v13_v0  ;;  %v16_v5 = vld [vmem:[%s302_s1 + $0x18] sm:$0xff]  ;;  %v17_v8 = vld [vmem:[%s302_s1 + $0x20] sm:$0xff]  ;;  %v18_v9 = vld [vmem:[%s302_s1 + $0x28] sm:$0xff] }
   0x3   :  { %v171_v7 = vpack.c.bf16 %v16_v5, %v15_v2 }
   0x4   :  { %169 = vmatpush3.bf16.msra.mxu0 %v168_v4 }
   0x5   :  { %170 = vmatprep.subr.bf16.mxu0 %v219_v3 }
   0x6   :  { %7 = vsyncpa [#allocation3], 0  ;;  %v174_v10 = vpack.c.bf16 %v18_v9, %v17_v8  ;;  %v19_v11 = vld [vmem:[%s302_s1 + $0x30] sm:$0xff]  ;;  %v20_v12 = vld [vmem:[%s302_s1 + $0x38] sm:$0xff]  ;;  %s222_s15 = smov [#allocation2]   ;;  %vm99_vm1 = vcmask 27648  }
   0x7   :  { %v177_v13 = vpack.c.bf16 %v20_v12, %v19_v11  ;;  %v21_v14 = vld [vmem:[%s302_s1 + $0x40] sm:$0xff]  ;;  %v22_v15 = vld [vmem:[%s302_s1 + $0x48] sm:$0xff]  ;;  %v23_v17 = vld [vmem:[%s302_s1 + $0x50] sm:$0xff]  ;;  %s107_s16 = sshll.u32 %s222_s15, 4  ;;  %s108_s16 = int_to_ptr.vmem [resolvable:$true] %s107_s16 }
   0x8   :  { %172 = vmatpush3.bf16.msra.mxu0 %v171_v7  ;;  %v180_v16 = vpack.c.bf16 %v22_v15, %v21_v14  ;;  %v24_v18 = vld [vmem:[%s302_s1 + $0x58] sm:$0xff]  ;;  %v25_v20 = vld [vmem:[%s302_s1 + $0x60] sm:$0xff]  ;;  %v26_v21 = vld [vmem:[%s302_s1 + $0x68] sm:$0xff]  ;;  %s195_s17 = scalar_lea.vmem %s108_s16, 64  ;;  %p200_p1 = scmp.lt.s32.totalorder %s108_s16, %s108_s16 }
   0x9   :  { %173 = vmatprep.subr.bf16.mxu0 %v219_v3  ;;  %v183_v19 = vpack.c.bf16 %v24_v18, %v23_v17  ;;  %v186_v22 = vpack.c.bf16 %v26_v21, %v25_v20  ;;  %v27_v23 = vld [vmem:[%s302_s1 + $0x70] sm:$0xff]  ;;  %v28_v24 = vld [vmem:[%s302_s1 + $0x78] sm:$0xff]  ;;  %v12_v26 = vld [vmem:[%s301_s0] sm:$0xf]  ;;  %p196_p0 = scmp.ne.s32.totalorder %s108_s16, %s195_s17  ;;  %p201_p2 = scmp.lt.s32.totalorder %s195_s17, %s195_s17 }
   0xa   :  { %v189_v25 = vpack.c.bf16 %v28_v24, %v27_v23 }
   0xb   :  { %p202_p3 = por %p201_p2, %p200_p1 }
   0xc   :  { %175 = vmatpush3.bf16.msra.mxu0 %v174_v10 }
   0xd   :  { %176 = vmatprep.subr.bf16.mxu0 %v219_v3  ;;  %p203_p4 = pnand %p202_p3, %p196_p0 }
  0x10   :  { %178 = vmatpush3.bf16.msra.mxu0 %v177_v13 }
  0x11   :  { %179 = vmatprep.subr.bf16.mxu0 %v219_v3 }
  0x14   :  { %181 = vmatpush3.bf16.msra.mxu0 %v180_v16 }
  0x15   :  { %182 = vmatprep.subr.bf16.mxu0 %v219_v3 }
  0x18   :  { %184 = vmatpush3.bf16.msra.mxu0 %v183_v19 }
  0x19   :  { %185 = vmatprep.subr.bf16.mxu0 %v219_v3 }
  0x1c   :  { %187 = vmatpush3.bf16.msra.mxu0 %v186_v22 }
  0x1d   :  { %188 = vmatprep.subr.bf16.mxu0 %v219_v3 }
  0x20   :  { %190 = vmatpush3.bf16.msra.mxu0 %v189_v25 }
  0x23   :  { %165 = vmatmul.mubr.f32.vlgmr.msra.gmra.mrb[0].mxu0 %v12_v26 }
  0xf6   :  { %v95_v27 = vpop.f32.mrb[0].mxu0 }
  0xf7   :  { %100 = vst.msk [vmem:[#allocation2] sm:$0xf] %vm99_vm1, %v95_v27  ;;  %v166_v28 = vpop.f32.mrb[1].mxu0 }
  0xf8   :  { %206 = shalt.err (!%p203_p4)
}
  0xf9   :  { %s207_s19 = scalar_lea.hbm %s303_s2, 64 }
  0xfa   :  { %p208_p5 = scmp.ne.s32.totalorder %s303_s2, %s207_s19  ;;  %p211_p6 = scmp.lt.u32.totalorder %s207_s19, %s303_s2 }
  0xfc   :  { %p213_p7 = pnand %p211_p6, %p208_p5 }
  0xfe   :  { %216 = shalt.err (!%p213_p7)
}
  0xff   :  { %110 = dma.vmem_to_hbm [thread:$0]  %s108_s16, 64, %s303_s2, [#allocation3]  }
 0x100   :  { %217 = dma.done.wait [#allocation3], 64  }
 0x101   :  { %218 = vsyncadd [#allocation3], 4294967232 }
 0x102   :  { %114 = vsyncpa [#allocation3], 1 }

</bundles_post_ra>
